<compile_context>
chip_gen: v6e
topology: v6e:2x2x1
jax: 0.10.0
libtpu: 0.0.40
codegen_flags: <defaults>
</compile_context>

<pallas_src>
import functools

import jax
import jax.numpy as jnp
from jax.experimental import pallas as pl
from jax.experimental.pallas import tpu as pltpu


def _round_up(n, m):
    return ((n + m - 1) // m) * m


@functools.lru_cache(maxsize=1)
def _vmem_capacity_bytes():
    """Per-core VMEM capacity; conservative fallback if the query fails."""
    try:
        cap = getattr(pltpu.get_tpu_info(), "vmem_capacity_bytes", None)
        if cap:
            return int(cap)
    except Exception:
        pass
    return 64 * 1024 * 1024  # v7x per-TensorCore VMEM (smallest of v5e/v6e/v7x)


def _mlp_kernel(x_ref, w1_ref, b1_ref, w2_ref, b2_ref, w3_ref, b3_ref, o_ref):
    """Fused 3-layer MLP for one tile of batch rows.

    x arrives at its native dtype and is cast to the weight dtype (bf16) in
    VMEM; every matmul accumulates in f32 on the MXU; bias-add + ReLU run in
    f32 on the VPU.  Dropout(p=0.2) is the identity at inference time.
    """
    x = x_ref[...].astype(w1_ref.dtype)  # cast in VMEM, not in HBM

    # Layer 1: Linear(input -> hidden) + ReLU
    h1 = jnp.dot(x, w1_ref[...], preferred_element_type=jnp.float32)
    h1 = jnp.maximum(h1 + b1_ref[...], 0.0)
    # TODO(synk): training-mode Dropout(0.2) (pltpu.prng_seed/prng_random_bits
    # + 1/(1-p) scaling) not implemented; eval semantics make it the identity.
    h1 = h1.astype(w2_ref.dtype)

    # Layer 2: Linear(hidden -> hidden // 2) + ReLU
    h2 = jnp.dot(h1, w2_ref[...], preferred_element_type=jnp.float32)
    h2 = jnp.maximum(h2 + b2_ref[...], 0.0)
    h2 = h2.astype(w3_ref.dtype)

    # Layer 3: Linear(hidden // 2 -> output)
    out = jnp.dot(h2, w3_ref[...], preferred_element_type=jnp.float32) + b3_ref[...]
    o_ref[...] = out.astype(o_ref.dtype)


@functools.partial(jax.jit, static_argnames=("tile_m", "compute_dtype", "out_dtype"))
def bert_mlp_forward(x, params, *, tile_m=512, compute_dtype=jnp.bfloat16,
                     out_dtype=None):
    """Fused BertMLP forward, tiled over batch rows only.

    Weights are cast to `compute_dtype` (no-op if already stored that way);
    x and biases are passed through untouched.  Feature dims are never padded
    in HBM: every weight/bias BlockSpec uses the full array shape, and the
    output is written at exactly (batch, d_out).
    """
    w1, b1, w2, b2, w3, b3 = params
    batch, d_in = x.shape
    d_h, d_h2, d_out = w1.shape[1], w2.shape[1], w3.shape[1]
    out_dtype = x.dtype if out_dtype is None else out_dtype

    # ---- batch tiling: big tiles, but keep >= 8 grid steps when possible ---
    target_steps = 8  # >= 4 steps per TensorCore on v7x megacore
    tile_cap = max(8, _round_up(pl.cdiv(batch, target_steps), 8))
    tile_m = int(max(8, min(tile_m, tile_cap)))
    grid = (pl.cdiv(batch, tile_m),)  # ragged final block is masked by Pallas

    # Weights in compute dtype (identity if caller already stores bf16).
    w1c = w1.astype(compute_dtype)
    w2c = w2.astype(compute_dtype)
    w3c = w3.astype(compute_dtype)
    # Biases stay in their native (f32) dtype: added to the f32 accumulator.

    # ---- VMEM budget + cost hint ------------------------------------------
    c_it = jnp.dtype(compute_dtype).itemsize
    x_it = jnp.dtype(x.dtype).itemsize
    o_it = jnp.dtype(out_dtype).itemsize
    b_it = jnp.dtype(b1.dtype).itemsize
    x_blk = tile_m * d_in * x_it
    o_blk = tile_m * d_out * o_it
    w_bytes = (d_in * d_h + d_h * d_h2 + d_h2 * d_out) * c_it
    b_bytes = (d_h + d_h2 + d_out) * b_it
    act_bytes = tile_m * (d_h + d_h2 + d_out) * 4  # f32 intermediates
    # x/out tiles double-buffer; weights/biases are single-buffered (Buffered(1)).
    vmem_needed = 2 * (x_blk + o_blk) + w_bytes + b_bytes + act_bytes
    vmem_limit = int(min(max(vmem_needed + (4 << 20), 16 << 20),
                         int(0.8 * _vmem_capacity_bytes())))
    # TODO(synk): if single-buffered weights ever exceed ~25-30 MiB (not the
    # case for the reference 768/512/10009 config, ~6 MiB bf16), add a grid
    # axis blocking d_out / d_h instead of keeping all weights resident.

    flops = 2 * batch * (d_in * d_h + d_h * d_h2 + d_h2 * d_out)
    bytes_accessed = (batch * d_in * x_it + w_bytes + b_bytes
                      + batch * d_out * o_it)
    cost = pl.CostEstimate(flops=flops, transcendentals=0,
                           bytes_accessed=bytes_accessed)

    # Grid-invariant operands: one resident block, no second pipeline buffer.
    def resident(shape):
        return pl.BlockSpec(shape, lambda i: (0, 0), pipeline_mode=pl.Buffered(1))

    out = pl.pallas_call(
        _mlp_kernel,
        out_shape=jax.ShapeDtypeStruct((batch, d_out), out_dtype),
        grid_spec=pl.GridSpec(
            grid=grid,
            in_specs=[
                pl.BlockSpec((tile_m, d_in), lambda i: (i, 0)),  # x tile (streamed)
                resident((d_in, d_h)),                           # w1
                resident((1, d_h)),                              # b1
                resident((d_h, d_h2)),                           # w2
                resident((1, d_h2)),                             # b2
                resident((d_h2, d_out)),                         # w3
                resident((1, d_out)),                            # b3
            ],
            out_specs=pl.BlockSpec((tile_m, d_out), lambda i: (i, 0)),
        ),
        compiler_params=pltpu.CompilerParams(
            dimension_semantics=("parallel",),  # batch axis shards across TCs
            vmem_limit_bytes=vmem_limit,
        ),
        cost_estimate=cost,
    )(x, w1c, b1, w2c, b2, w3c, b3)

    return out


def init_params(key, input_size, hidden_size, output_size, dtype=jnp.float32):
    """Deterministic PyTorch-style Linear init: U(-1/sqrt(fan_in), +1/sqrt(fan_in))."""
    dims = [
        (input_size, hidden_size),
        (hidden_size, hidden_size // 2),
        (hidden_size // 2, output_size),
    ]
    params = []
    for (fan_in, fan_out) in dims:
        key, kw, kb = jax.random.split(key, 3)
        bound = 1.0 / (fan_in ** 0.5)
        w = jax.random.uniform(kw, (fan_in, fan_out), dtype, -bound, bound)
        b = jax.random.uniform(kb, (1, fan_out), dtype, -bound, bound)
        params.extend([w, b])
    return tuple(params)


def reference_forward(x, params):
    """Pure-JAX f32 reference (eval-mode dropout = identity)."""
    w1, b1, w2, b2, w3, b3 = params
    h1 = jnp.maximum(x @ w1 + b1, 0.0)
    h2 = jnp.maximum(h1 @ w2 + b2, 0.0)
    return h2 @ w3 + b3


if __name__ == "__main__":
    # Small shapes consistent with the module's structure
    # (input_size -> hidden_size -> hidden_size//2 -> output_size).
    batch = 256
    input_size = 128
    hidden_size = 64
    output_size = 80

    key = jax.random.PRNGKey(0)
    key_x, key_p = jax.random.split(key)

    x = jax.random.normal(key_x, (batch, input_size), dtype=jnp.float32)
    params = init_params(key_p, input_size, hidden_size, output_size)

    # tile_m default (512) is auto-shrunk to 32 here so the grid has 8 steps
    # (>= 4 per TensorCore on v7x); at production batch*seq it stays 512.
    out = bert_mlp_forward(x, params)
    out = jax.block_until_ready(out)

    ref = reference_forward(x, params)
    assert out.shape == (batch, output_size), out.shape
    # bf16 MXU inputs with f32 accumulation -> looser tolerance vs the f32 ref.
    max_err = float(jnp.max(jnp.abs(out - ref)))
    assert jnp.allclose(out, ref, atol=5e-2, rtol=5e-2), f"mismatch, max_err={max_err}"

    print("KERNEL_OK")
</pallas_src>

<mosaic_0001>
module attributes {stable_mosaic.version = 11 : i64} {
  func.func @_mlp_kernel(%arg0: i32, %arg1: memref<32x128xf32, #tpu.memory_space<vmem>>, %arg2: memref<128x64xbf16, #tpu.memory_space<vmem>>, %arg3: memref<1x64xf32, #tpu.memory_space<vmem>>, %arg4: memref<64x32xbf16, #tpu.memory_space<vmem>>, %arg5: memref<1x32xf32, #tpu.memory_space<vmem>>, %arg6: memref<32x80xbf16, #tpu.memory_space<vmem>>, %arg7: memref<1x80xf32, #tpu.memory_space<vmem>>, %arg8: memref<32x80xf32, #tpu.memory_space<vmem>>) attributes {dimension_semantics = [#tpu.dimension_semantics<parallel>], iteration_bounds = array<i64: 8>, scalar_prefetch = 0 : i64, scratch_operands = 0 : i64, tpu.core_type = #tpu.core_type<tc>, window_params = [{transform_indices = @transform_0, window_bounds = array<i64: 32, 128>}, {pipeline_mode = #tpu.pipeline_mode<synchronous>, transform_indices = @transform_1, window_bounds = array<i64: 128, 64>}, {pipeline_mode = #tpu.pipeline_mode<synchronous>, transform_indices = @transform_2, window_bounds = array<i64: 1, 64>}, {pipeline_mode = #tpu.pipeline_mode<synchronous>, transform_indices = @transform_3, window_bounds = array<i64: 64, 32>}, {pipeline_mode = #tpu.pipeline_mode<synchronous>, transform_indices = @transform_4, window_bounds = array<i64: 1, 32>}, {pipeline_mode = #tpu.pipeline_mode<synchronous>, transform_indices = @transform_5, window_bounds = array<i64: 32, 80>}, {pipeline_mode = #tpu.pipeline_mode<synchronous>, transform_indices = @transform_6, window_bounds = array<i64: 1, 80>}, {transform_indices = @transform_7, window_bounds = array<i64: 32, 80>}]} {
    %c0 = arith.constant 0 : index
    %c0_0 = arith.constant 0 : index
    %0 = vector.load %arg1[%c0, %c0_0] : memref<32x128xf32, #tpu.memory_space<vmem>>, vector<32x128xf32>
    %1 = arith.truncf %0 : vector<32x128xf32> to vector<32x128xbf16>
    %c0_1 = arith.constant 0 : index
    %c0_2 = arith.constant 0 : index
    %2 = vector.load %arg2[%c0_1, %c0_2] : memref<128x64xbf16, #tpu.memory_space<vmem>>, vector<128x64xbf16>
    %cst = arith.constant dense<0.000000e+00> : vector<32x64xf32>
    %3 = tpu.matmul %1, %2, %cst {dimension_numbers = #tpu.dot_dimension_numbers<[1], [0], [0], [1], [0, 0, 1, 1], [], []>} : vector<32x128xbf16>, vector<128x64xbf16>, vector<32x64xf32> -> vector<32x64xf32>
    %c0_3 = arith.constant 0 : index
    %c0_4 = arith.constant 0 : index
    %4 = vector.load %arg3[%c0_3, %c0_4] : memref<1x64xf32, #tpu.memory_space<vmem>>, vector<1x64xf32>
    %5 = vector.broadcast %4 : vector<1x64xf32> to vector<32x64xf32>
    %6 = arith.addf %3, %5 : vector<32x64xf32>
    %cst_5 = arith.constant 0.000000e+00 : f32
    %7 = vector.broadcast %cst_5 : f32 to vector<32x64xf32>
    %8 = arith.maximumf %6, %7 : vector<32x64xf32>
    %9 = arith.truncf %8 : vector<32x64xf32> to vector<32x64xbf16>
    %c0_6 = arith.constant 0 : index
    %c0_7 = arith.constant 0 : index
    %10 = vector.load %arg4[%c0_6, %c0_7] : memref<64x32xbf16, #tpu.memory_space<vmem>>, vector<64x32xbf16>
    %cst_8 = arith.constant dense<0.000000e+00> : vector<32x32xf32>
    %11 = tpu.matmul %9, %10, %cst_8 {dimension_numbers = #tpu.dot_dimension_numbers<[1], [0], [0], [1], [0, 0, 1, 1], [], []>} : vector<32x64xbf16>, vector<64x32xbf16>, vector<32x32xf32> -> vector<32x32xf32>
    %c0_9 = arith.constant 0 : index
    %c0_10 = arith.constant 0 : index
    %12 = vector.load %arg5[%c0_9, %c0_10] : memref<1x32xf32, #tpu.memory_space<vmem>>, vector<1x32xf32>
    %13 = vector.broadcast %12 : vector<1x32xf32> to vector<32x32xf32>
    %14 = arith.addf %11, %13 : vector<32x32xf32>
    %cst_11 = arith.constant 0.000000e+00 : f32
    %15 = vector.broadcast %cst_11 : f32 to vector<32x32xf32>
    %16 = arith.maximumf %14, %15 : vector<32x32xf32>
    %17 = arith.truncf %16 : vector<32x32xf32> to vector<32x32xbf16>
    %c0_12 = arith.constant 0 : index
    %c0_13 = arith.constant 0 : index
    %18 = vector.load %arg6[%c0_12, %c0_13] : memref<32x80xbf16, #tpu.memory_space<vmem>>, vector<32x80xbf16>
    %cst_14 = arith.constant dense<0.000000e+00> : vector<32x80xf32>
    %19 = tpu.matmul %17, %18, %cst_14 {dimension_numbers = #tpu.dot_dimension_numbers<[1], [0], [0], [1], [0, 0, 1, 1], [], []>} : vector<32x32xbf16>, vector<32x80xbf16>, vector<32x80xf32> -> vector<32x80xf32>
    %c0_15 = arith.constant 0 : index
    %c0_16 = arith.constant 0 : index
    %20 = vector.load %arg7[%c0_15, %c0_16] : memref<1x80xf32, #tpu.memory_space<vmem>>, vector<1x80xf32>
    %21 = vector.broadcast %20 : vector<1x80xf32> to vector<32x80xf32>
    %22 = arith.addf %19, %21 : vector<32x80xf32>
    %c0_17 = arith.constant 0 : index
    %c0_18 = arith.constant 0 : index
    %23 = vector.load %arg8[%c0_17, %c0_18] : memref<32x80xf32, #tpu.memory_space<vmem>>, vector<32x80xf32>
    tpu.vector_store %arg8[%c0_17, %c0_18], %22 {strides = array<i32>} : memref<32x80xf32, #tpu.memory_space<vmem>>, vector<32x80xf32>,
    return
  }
  func.func @transform_0(%arg0: i32) -> (i32, i32) {
    %c0_i32 = arith.constant 0 : i32
    %c0_i32_0 = arith.constant 0 : i32
    return %arg0, %c0_i32 : i32, i32
  }
  func.func @transform_1(%arg0: i32) -> (i32, i32) {
    %c0_i32 = arith.constant 0 : i32
    %c0_i32_0 = arith.constant 0 : i32
    %c0_i32_1 = arith.constant 0 : i32
    return %c0_i32, %c0_i32_0 : i32, i32
  }
  func.func @transform_2(%arg0: i32) -> (i32, i32) {
    %c0_i32 = arith.constant 0 : i32
    %c0_i32_0 = arith.constant 0 : i32
    %c0_i32_1 = arith.constant 0 : i32
    return %c0_i32, %c0_i32_0 : i32, i32
  }
  func.func @transform_3(%arg0: i32) -> (i32, i32) {
    %c0_i32 = arith.constant 0 : i32
    %c0_i32_0 = arith.constant 0 : i32
    %c0_i32_1 = arith.constant 0 : i32
    return %c0_i32, %c0_i32_0 : i32, i32
  }
  func.func @transform_4(%arg0: i32) -> (i32, i32) {
    %c0_i32 = arith.constant 0 : i32
    %c0_i32_0 = arith.constant 0 : i32
    %c0_i32_1 = arith.constant 0 : i32
    return %c0_i32, %c0_i32_0 : i32, i32
  }
  func.func @transform_5(%arg0: i32) -> (i32, i32) {
    %c0_i32 = arith.constant 0 : i32
    %c0_i32_0 = arith.constant 0 : i32
    %c0_i32_1 = arith.constant 0 : i32
    return %c0_i32, %c0_i32_0 : i32, i32
  }
  func.func @transform_6(%arg0: i32) -> (i32, i32) {
    %c0_i32 = arith.constant 0 : i32
    %c0_i32_0 = arith.constant 0 : i32
    %c0_i32_1 = arith.constant 0 : i32
    return %c0_i32, %c0_i32_0 : i32, i32
  }
  func.func @transform_7(%arg0: i32) -> (i32, i32) {
    %c0_i32 = arith.constant 0 : i32
    %c0_i32_0 = arith.constant 0 : i32
    return %arg0, %c0_i32 : i32, i32
  }
}

</mosaic_0001>

<bundles_post_ra>
// kernel: bert_mlp_forward.1
= control target key start
LH: loop header
LB: loop body
LE: loop exit
PB: predicated region body
PF: predicated region fallthrough
CT: control target
= control target key end

     0   :  { %s818_s24 = smov 0   ;;  %s893_s0 = inlined_call_operand.vmem [shape: f32[256,128], index: 0, kind: input, shape index: {}]   ;;  %s894_s1 = inlined_call_operand.vmem [shape: bf16[128,64], index: 1, kind: input, shape index: {}]   ;;  %s895_s2 = inlined_call_operand.vmem [shape: f32[1,64], index: 2, kind: input, shape index: {}]   ;;  %s896_s3 = inlined_call_operand.vmem [shape: bf16[64,32], index: 3, kind: input, shape index: {}]   ;;  %s897_s4 = inlined_call_operand.vmem [shape: f32[1,32], index: 4, kind: input, shape index: {}]   ;;  %s898_s5 = inlined_call_operand.vmem [shape: bf16[32,80], index: 5, kind: input, shape index: {}]   ;;  %s899_s6 = inlined_call_operand.vmem [shape: f32[1,80], index: 6, kind: input, shape index: {}]   ;;  %s900_s7 = inlined_call_operand.vmem [shape: f32[256,80], index: 7, kind: output, shape index: {}]  }
   0x1 LB: > { %s656_s25 = sadd.s32 4294967295, %s776_s24   ;;  %p660_p0 = scmp.ge.s32.totalorder %s776_s24, 1  ;;  %s776_s24 = sphi %s818_s24, %s17_s24  }
   0x2   : > { %p238_p1 = scmp.lt.s32.totalorder %s776_s24, 9 }
   0x4   : > { %p239_p2 = pnand %p660_p0, %p238_p1 }
   0x5   : > { %s661_s28 = sshll.u32 (!%p239_p2), %s656_s25, 2 }
   0x6   : > { %242 = sbr.rel (%p239_p2) target bundleno = 658 (0x292), region = 48  ;;  %p271_p3 = scmp.lt.s32.totalorder (!%p239_p2), %s661_s28, 31 }
   0xb   : > { %v756_v0 = vld [vmem:[%s894_s1 + $0x38] sm:$0xff]   ;;  %v757_v1 = vld [vmem:[%s894_s1 + $0x30] sm:$0xff]   ;;  %s902_s28 = smov (!%p271_p3, %s661_s28), 31  ;;  %v758_v2 = vld [vmem:[%s894_s1 + $0x28] sm:$0xff]   ;;  %vm454_vm0 = vcmask 523264   ;;  %vm539_vm1 = vcmask 261120  }
   0xc   : > { %708 = vmatprep.subr.bf16.mxu0 %v756_v0  ;;  %s662_s10 = sshll.u32 %s902_s28, 3  ;;  %v759_v3 = vld [vmem:[%s894_s1 + $0x20] sm:$0xff]   ;;  %v760_v7 = vld [vmem:[%s894_s1 + $0x18] sm:$0xff]   ;;  %v761_v9 = vld [vmem:[%s894_s1 + $0x10] sm:$0xff]   ;;  %vm595_vm2 = vcmask 654336  }
   0xd   : > { %709 = vmatpush3.bf16.msra.mxu0 %v756_v0  ;;  %s274_s13 = scalar_lea.vmem %s893_s0, %s662_s10  ;;  %v764_v8 = vld [vmem:[%s896_s3 + $0x18] sm:$0xff]   ;;  %v762_v10 = vld [vmem:[%s894_s1 + $0x8] sm:$0xff]   ;;  %v763_v11 = vld [vmem:[%s894_s1] sm:$0xff]   ;;  %s280_s25 = scalar_lea.vmem %s900_s7, %s662_s10 }
   0xe   : > { %710 = vmatprep.subr.bf16.mxu0 %v757_v1  ;;  %v283_v4 = vld [vmem:[%s274_s13] sm:$0xff]  ;;  %v284_v5 = vld [vmem:[%s274_s13 + $0x8] sm:$0xff]  ;;  %728 = vmatprep.subr.bf16.mxu1 %v764_v8  ;;  %v285_v12 = vld [vmem:[%s274_s13 + $0x10] sm:$0xff] }
   0xf   : > { %v287_v6 = vpack.c.bf16 %v284_v5, %v283_v4  ;;  %729 = vmatpush3.bf16.msra.mxu1 %v764_v8  ;;  %v286_v13 = vld [vmem:[%s274_s13 + $0x18] sm:$0xff]  ;;  %v765_v15 = vld [vmem:[%s896_s3 + $0x10] sm:$0xff]   ;;  %v766_v16 = vld [vmem:[%s896_s3 + $0x8] sm:$0xff]  }
  0x10   : > { %v288_v14 = vpack.c.bf16 %v286_v13, %v285_v12  ;;  %730 = vmatprep.subr.bf16.mxu1 %v765_v15  ;;  %v767_v17 = vld [vmem:[%s896_s3] sm:$0xff]   ;;  %v768_v33 = vld [vmem:[%s898_s5 + $0x8] sm:$0xff]  }
  0x11   : > { %711 = vmatpush3.bf16.msra.mxu0 %v757_v1  ;;  %724 = vmatprep.mubr.bf16.mxu0 %v287_v6  ;;  %v665_v20 = vld [vmem:[%s895_s2] ss:$0 sm:$0xff] }
  0x12   : > { %712 = vmatprep.subr.bf16.mxu0 %v758_v2  ;;  %v769_v34 = vld [vmem:[%s898_s5] sm:$0xff]  }
  0x13   : > { %731 = vmatpush3.bf16.msra.mxu1 %v765_v15  ;;  %v674_v37 = vld [vmem:[%s897_s4] ss:$0 sm:$0xff] }
  0x14   : > { %732 = vmatprep.subr.bf16.mxu1 %v766_v16  ;;  %v681_v50 = vld [vmem:[%s899_s6] ss:$0 sm:$0xff] }
  0x15   : > { %713 = vmatpush3.bf16.msra.mxu0 %v758_v2 }
  0x16   : > { %714 = vmatprep.subr.bf16.mxu0 %v759_v3 }
  0x17   : > { %733 = vmatpush3.bf16.msra.mxu1 %v766_v16 }
  0x18   : > { %734 = vmatprep.subr.bf16.mxu1 %v767_v17 }
  0x19   : > { %715 = vmatpush3.bf16.msra.mxu0 %v759_v3 }
  0x1a   : > { %716 = vmatprep.subr.bf16.mxu0 %v760_v7 }
  0x1b   : > { %735 = vmatpush3.bf16.msra.mxu1 %v767_v17 }
  0x1c   : > { %740 = vmatprep.subr.bf16.mxu1 %v768_v33 }
  0x1d   : > { %717 = vmatpush3.bf16.msra.mxu0 %v760_v7 }
  0x1e   : > { %718 = vmatprep.subr.bf16.mxu0 %v761_v9 }
  0x21   : > { %719 = vmatpush3.bf16.msra.mxu0 %v761_v9 }
  0x22   : > { %720 = vmatprep.subr.bf16.mxu0 %v762_v10 }
  0x25   : > { %721 = vmatpush3.bf16.msra.mxu0 %v762_v10 }
  0x26   : > { %722 = vmatprep.subr.bf16.mxu0 %v763_v11 }
  0x29   : > { %723 = vmatpush3.bf16.msra.mxu0 %v763_v11 }
  0x2c   : > { %725 = vmatmul.mubr.bf16.vlgmr.msra.gmra.mxu0 %v288_v14 }
  0xec   : > { %v726_v18 = vpop.f32.mrf.mxu0 }
  0xed   : > { %v403_v24 = vadd.f32 %v726_v18, %v665_v20 }
  0xee   : > { %v394_v19 = vpop.f32.mrf.mxu0 }
  0xef   : > { %v395_v22 = vadd.f32 %v665_v20, %v394_v19  ;;  %v411_v30 = vmax.f32 %v403_v24, 0.0 }
  0xf0   : > { %v727_v21 = vpop.f32.mrf.mxu0 }
  0xf1   : > { %v406_v23 = vadd.f32 %v727_v21, %v665_v20  ;;  %v409_v28 = vmax.f32 %v395_v22, 0.0 }
  0xf2   : > { %v397_v25 = vpop.f32.mrf.mxu0 }
  0xf3   : > { %v398_v26 = vadd.f32 %v665_v20, %v397_v25  ;;  %v412_v27 = vmax.f32 %v406_v23, 0.0 }
  0xf5   : > { %v410_v29 = vmax.f32 %v398_v26, 0.0  ;;  %v414_v32 = vpack.c.bf16 %v412_v27, %v411_v30 }
  0xf7   : > { %v413_v31 = vpack.c.bf16 %v410_v29, %v409_v28 }
  0xf9   : > { %736 = vmatprep.mubr.msk.bf16.mxu1 %vm454_vm0, %v413_v31 }
  0xfa   : > { %737 = vmatmul.mubr.msk.bf16.vlgmr.msra.gmra.mxu1 %vm454_vm0, %v414_v32 }
  0xfb   : > { %741 = vmatpush3.bf16.msra.mxu1 %v768_v33 }
  0xfc   : > { %742 = vmatprep.subr.bf16.mxu1 %v769_v34 }
  0xff   : > { %743 = vmatpush3.bf16.msra.mxu1 %v769_v34 }
 0x1ba   : > { %v738_v35 = vpop.f32.mrf.mxu1 }
 0x1bb   : > { %v504_v41 = vadd.f32 %v738_v35, %v674_v37 }
 0x1bc   : > { %v495_v36 = vpop.f32.mrf.mxu1 }
 0x1bd   : > { %v496_v39 = vadd.f32 %v674_v37, %v495_v36  ;;  %v512_v47 = vmax.f32 %v504_v41, 0.0 }
 0x1be   : > { %v739_v38 = vpop.f32.mrf.mxu1 }
 0x1bf   : > { %v507_v40 = vadd.f32 %v739_v38, %v674_v37  ;;  %v510_v45 = vmax.f32 %v496_v39, 0.0 }
 0x1c0   : > { %v498_v42 = vpop.f32.mrf.mxu1 }
 0x1c1   : > { %v499_v43 = vadd.f32 %v674_v37, %v498_v42  ;;  %v513_v44 = vmax.f32 %v507_v40, 0.0 }
 0x1c3   : > { %v511_v46 = vmax.f32 %v499_v43, 0.0  ;;  %v515_v49 = vpack.c.bf16 %v513_v44, %v512_v47 }
 0x1c5   : > { %v514_v48 = vpack.c.bf16 %v511_v46, %v510_v45 }
 0x1c7   : > { %744 = vmatprep.mubr.msk.bf16.mxu1 %vm539_vm1, %v514_v48 }
 0x1c8   : > { %745 = vmatmul.mubr.msk.bf16.vlgmr.msra.gmra.mxu1 %vm539_vm1, %v515_v49 }
 0x288   : > { %v746_v51 = vpop.f32.mrf.mxu1 }
 0x289   : > { %v589_v52 = vadd.f32 %v746_v51, %v681_v50 }
 0x28a   : > { %v580_v53 = vpop.f32.mrf.mxu1 }
 0x28b   : > { %598 = vst.msk [vmem:[%s280_s25 + $0x10] sm:$0xff] %vm595_vm2, %v589_v52  ;;  %v581_v54 = vadd.f32 %v681_v50, %v580_v53 }
 0x28c   : > { %v747_v55 = vpop.f32.mrf.mxu1 }
 0x28d   : > { %596 = vst.msk [vmem:[%s280_s25] sm:$0xff] %vm595_vm2, %v581_v54  ;;  %v592_v56 = vadd.f32 %v747_v55, %v681_v50 }
 0x28e   : > { %v583_v57 = vpop.f32.mrf.mxu1 }
 0x28f   : > { %599 = vst.msk [vmem:[%s280_s25 + $0x18] sm:$0xff] %vm595_vm2, %v592_v56  ;;  %v584_v58 = vadd.f32 %v681_v50, %v583_v57 }
 0x291   : > { %597 = vst.msk [vmem:[%s280_s25 + $0x8] sm:$0xff] %vm595_vm2, %v584_v58 }
 0x292 PF: > { %s17_s24 = sadd.s32 1, %s776_s24  }
 0x293   : > { %p14_p4 = scmp.ge.s32.totalorder %s17_s24, 10  }
 0x295   :  { %16 = sbr.rel (!%p14_p4) target bundleno = 1 (0x1), region = 78 }

</bundles_post_ra>
